<compile_context>
chip_gen: v7x
topology: tpu7x:2x2x1
jax: 0.10.0
libtpu: 0.0.40
codegen_flags: <defaults>
</compile_context>

<pallas_src>
import math

import jax
import jax.numpy as jnp
from jax import lax
from jax.experimental import pallas as pl
from jax.experimental.pallas import tpu as pltpu


_INV_SQRT2 = 1.0 / math.sqrt(2.0)


def _gelu(x, approximate):
    if approximate:
        # tanh approximation -> EUP (separate VLIW slot).
        return jax.nn.gelu(x, approximate=True)
    # nn.GELU() default: exact erf-based GELU (VALU polynomial).
    return 0.5 * x * (1.0 + lax.erf(x * jnp.asarray(_INV_SQRT2, x.dtype)))


def _round_up(x, m):
    return ((x + m - 1) // m) * m


def _make_mlp_kernel(num_linears, *, matmul_dtype, approx_gelu):
    """refs = (x, w0, b0, w1, b1, ..., out).

    Computes the transposed chain h^T = GELU(W @ h_prev^T + b_col); the output
    ref holds (d_out, tile_n) with the batch axis on lanes (lane-dense store).
    """

    def kernel(*refs):
        x_ref = refs[0]
        o_ref = refs[-1]

        # First layer: W_fc (D1, D_in) contracted with x (tile_n, D_in) on the
        # feature axis -> (D1, tile_n).  "NT" matmul, no explicit transpose.
        w0 = refs[1][...]                              # already matmul_dtype
        b0 = refs[2][...]                              # (D1, 1) f32 column
        h = lax.dot_general(
            w0, x_ref[...].astype(matmul_dtype),
            dimension_numbers=(((1,), (1,)), ((), ())),
            preferred_element_type=jnp.float32) + b0
        h = _gelu(h, approx_gelu)

        # Remaining layers: canonical (D_out, K) @ (K, tile_n) on the MXU.
        for i in range(1, num_linears):
            w = refs[1 + 2 * i][...]                   # (D_out, K)
            b = refs[2 + 2 * i][...]                   # (D_out, 1) f32
            h = jnp.dot(w, h.astype(matmul_dtype),
                        preferred_element_type=jnp.float32) + b
            h = _gelu(h, approx_gelu)

        o_ref[...] = h.astype(o_ref.dtype)             # lane-dense store

    return kernel


def _x_block_spec(tile_n, d_in, n_buffers):
    index_map = lambda i: (i, 0)
    if n_buffers > 2 and hasattr(pl, "Buffered"):
        try:
            return pl.BlockSpec((tile_n, d_in), index_map,
                                pipeline_mode=pl.Buffered(n_buffers))
        except TypeError:
            pass
    return pl.BlockSpec((tile_n, d_in), index_map)


def mlp_layers_forward(x, params, *, tile_n=None, matmul_dtype=jnp.bfloat16,
                       approx_gelu=True, return_transposed=False,
                       vmem_budget_bytes=24 << 20):
    """Fused forward for MLP_Layers.

    x:      (N, word_embedding_dim)
    params: list of (W, b) in native PyTorch nn.Linear layout: W (out, in),
            b (out,).  params[0] is `fc`; the rest are the hidden MLP layers.
            Dropout is identity at inference and therefore omitted.
    Returns (N, layers[-1]); output dtype follows x.dtype (math stays f32).
    """
    N, D_in = x.shape
    num_linears = len(params)
    widths = [w.shape[0] for w, _ in params]
    d_out = widths[-1]
    out_dtype = x.dtype
    if matmul_dtype is None:
        matmul_dtype = jnp.float32

    # --- tile_n = lane extent of the transposed output block.  Multiple of
    # 128 when tiled (lane-dense stores, legal ragged edge); single full block
    # for small N.  Keep grid_n >= 2 for mid/large N (2 TCs on v7x). ---
    x_itemsize = x.dtype.itemsize
    out_itemsize = jnp.dtype(out_dtype).itemsize
    if tile_n is None:
        if N <= 256:
            tile_n = N
        else:
            tile_n = min(512, _round_up(pl.cdiv(N, 2), 128))
            per_row = (3 * D_in * x_itemsize          # x, up to triple-buffer
                       + 2 * d_out * out_itemsize     # out, double-buffered
                       + 2 * max(widths) * 4)         # f32 intermediates
            while tile_n > 128 and tile_n * per_row > vmem_budget_bytes:
                tile_n -= 128
    if N > tile_n:
        assert tile_n % 128 == 0, "tiled runs need tile_n % 128 == 0"
    grid_n = pl.cdiv(N, tile_n)

    # --- kernel operands: weights cast to matmul_dtype once HERE (not per
    # grid step on the VPU); biases stay f32 as lane-broadcast columns. ---
    flat_args = [x]
    in_specs = [_x_block_spec(tile_n, D_in,
                              n_buffers=3 if grid_n >= 3 else 2)]
    flops = 0
    transcendentals = 0
    param_bytes = 0
    for w, b in params:
        w_k = w.astype(matmul_dtype)
        b_k = b.reshape(-1, 1).astype(jnp.float32)
        flat_args += [w_k, b_k]
        in_specs += [pl.BlockSpec(w_k.shape, lambda i: (0, 0)),
                     pl.BlockSpec(b_k.shape, lambda i: (0, 0))]
        flops += 2 * N * w.shape[0] * w.shape[1]
        transcendentals += N * w.shape[0]
        param_bytes += w_k.size * w_k.dtype.itemsize + b_k.size * 4

    out_specs = pl.BlockSpec((d_out, tile_n), lambda i: (0, i))

    # Weights/biases use constant index_maps -> fetched once, not grid_n times.
    bytes_accessed = (x.size * x_itemsize + param_bytes
                      + N * d_out * out_itemsize)

    vmem_estimate = (2 * param_bytes
                     + tile_n * (3 * D_in * x_itemsize
                                 + 2 * d_out * out_itemsize
                                 + 2 * max(widths) * 4))
    vmem_limit = None
    if vmem_estimate > (28 << 20):
        vmem_limit = min(int(vmem_estimate * 3 // 2), 60 << 20)

    kernel = _make_mlp_kernel(num_linears, matmul_dtype=matmul_dtype,
                              approx_gelu=approx_gelu)

    out_t = pl.pallas_call(
        kernel,
        out_shape=jax.ShapeDtypeStruct((d_out, N), out_dtype),
        grid=(grid_n,),
        in_specs=in_specs,
        out_specs=out_specs,
        compiler_params=pltpu.CompilerParams(
            dimension_semantics=("parallel",),
            vmem_limit_bytes=vmem_limit),
        cost_estimate=pl.CostEstimate(
            flops=flops,
            transcendentals=transcendentals,
            bytes_accessed=bytes_accessed),
    )(*flat_args)

    if return_transposed:
        return out_t            # (d_out, N): lane-dense, no extra copy
    return out_t.T              # (N, d_out): matches the PyTorch module


def init_mlp_layers_params(key, word_embedding_dim, item_embedding_dim, layers):
    """Matches the module's _init_weights: xavier_normal_ on Linear weights
    (native PyTorch (out, in) layout), zeros on biases."""

    def xavier(k, fan_out, fan_in):
        std = math.sqrt(2.0 / (fan_in + fan_out))
        return std * jax.random.normal(k, (fan_out, fan_in), jnp.float32)

    params = []
    key, sub = jax.random.split(key)
    params.append((xavier(sub, item_embedding_dim, word_embedding_dim),
                   jnp.zeros((item_embedding_dim,), jnp.float32)))
    for d_in, d_out in zip(layers[:-1], layers[1:]):
        key, sub = jax.random.split(key)
        params.append((xavier(sub, d_out, d_in),
                       jnp.zeros((d_out,), jnp.float32)))
    return params


def reference_forward(x, params):
    """Plain-JAX reference: exact erf GELU, f32, PyTorch Linear semantics."""
    h = x.astype(jnp.float32)
    for w, b in params:
        h = _gelu(h @ w.T + b, approximate=False)
    return h


if __name__ == "__main__":
    # Small config consistent with the module's constructor.
    word_embedding_dim = 48
    item_embedding_dim = 32          # must equal layers[0]
    layers = [32, 64, 32]
    drop_rate = 0.1                  # eval-mode dropout == identity

    key = jax.random.PRNGKey(0)
    key, k_params = jax.random.split(key)
    params = init_mlp_layers_params(k_params, word_embedding_dim,
                                    item_embedding_dim, layers)

    # --- small batch: single grid step; exact mode matches reference tightly.
    N = 16
    key, kx = jax.random.split(key)
    x = jax.random.normal(kx, (N, word_embedding_dim), dtype=jnp.float32)
    ref = reference_forward(x, params)

    out_exact = jax.block_until_ready(
        mlp_layers_forward(x, params, matmul_dtype=jnp.float32,
                           approx_gelu=False))
    assert out_exact.shape == (N, layers[-1]), out_exact.shape
    assert jnp.allclose(out_exact, ref, atol=1e-5, rtol=1e-5), \
        float(jnp.max(jnp.abs(out_exact - ref)))

    # --- default fast path: bf16 MXU operands + tanh GELU (looser tolerance).
    out_fast = jax.block_until_ready(mlp_layers_forward(x, params))
    assert out_fast.shape == (N, layers[-1]), out_fast.shape
    assert jnp.allclose(out_fast, ref, atol=3e-2, rtol=3e-2), \
        float(jnp.max(jnp.abs(out_fast - ref)))

    # --- N not a multiple of the tile: grid_n = 2, ragged last block, and
    # lane-dense (32, 256) output tiles.  Exact mode for a tight check that
    # the masked ragged edge is handled correctly (no wrapper-side padding).
    N2 = 260
    key, kx2 = jax.random.split(key)
    x2 = jax.random.normal(kx2, (N2, word_embedding_dim), dtype=jnp.float32)
    ref2 = reference_forward(x2, params)
    out2 = jax.block_until_ready(
        mlp_layers_forward(x2, params, matmul_dtype=jnp.float32,
                           approx_gelu=False))
    assert out2.shape == (N2, layers[-1]), out2.shape
    assert jnp.allclose(out2, ref2, atol=1e-5, rtol=1e-5), \
        float(jnp.max(jnp.abs(out2 - ref2)))

    print("KERNEL_OK")
</pallas_src>

<mosaic_0001>
module attributes {stable_mosaic.version = 11 : i64} {
  func.func @kernel(%arg0: i32, %arg1: memref<16x48xf32, #tpu.memory_space<vmem>>, %arg2: memref<32x48xf32, #tpu.memory_space<vmem>>, %arg3: memref<32x1xf32, #tpu.memory_space<vmem>>, %arg4: memref<64x32xf32, #tpu.memory_space<vmem>>, %arg5: memref<64x1xf32, #tpu.memory_space<vmem>>, %arg6: memref<32x64xf32, #tpu.memory_space<vmem>>, %arg7: memref<32x1xf32, #tpu.memory_space<vmem>>, %arg8: memref<32x16xf32, #tpu.memory_space<vmem>>) attributes {dimension_semantics = [#tpu.dimension_semantics<parallel>], iteration_bounds = array<i64: 1>, scalar_prefetch = 0 : i64, scratch_operands = 0 : i64, tpu.core_type = #tpu.core_type<tc>, window_params = [{transform_indices = @transform_0, window_bounds = array<i64: 16, 48>}, {pipeline_mode = #tpu.pipeline_mode<synchronous>, transform_indices = @transform_1, window_bounds = array<i64: 32, 48>}, {pipeline_mode = #tpu.pipeline_mode<synchronous>, transform_indices = @transform_2, window_bounds = array<i64: 32, 1>}, {pipeline_mode = #tpu.pipeline_mode<synchronous>, transform_indices = @transform_3, window_bounds = array<i64: 64, 32>}, {pipeline_mode = #tpu.pipeline_mode<synchronous>, transform_indices = @transform_4, window_bounds = array<i64: 64, 1>}, {pipeline_mode = #tpu.pipeline_mode<synchronous>, transform_indices = @transform_5, window_bounds = array<i64: 32, 64>}, {pipeline_mode = #tpu.pipeline_mode<synchronous>, transform_indices = @transform_6, window_bounds = array<i64: 32, 1>}, {transform_indices = @transform_7, window_bounds = array<i64: 32, 16>}]} {
    %c0 = arith.constant 0 : index
    %c0_0 = arith.constant 0 : index
    %0 = vector.load %arg2[%c0, %c0_0] : memref<32x48xf32, #tpu.memory_space<vmem>>, vector<32x48xf32>
    %c0_1 = arith.constant 0 : index
    %c0_2 = arith.constant 0 : index
    %1 = vector.load %arg3[%c0_1, %c0_2] : memref<32x1xf32, #tpu.memory_space<vmem>>, vector<32x1xf32>
    %c0_3 = arith.constant 0 : index
    %c0_4 = arith.constant 0 : index
    %2 = vector.load %arg1[%c0_3, %c0_4] : memref<16x48xf32, #tpu.memory_space<vmem>>, vector<16x48xf32>
    %cst = arith.constant dense<0.000000e+00> : vector<32x16xf32>
    %3 = tpu.matmul %0, %2, %cst {dimension_numbers = #tpu.dot_dimension_numbers<[1], [1], [0], [0], [0, 0, 1, 0], [], []>} : vector<32x48xf32>, vector<16x48xf32>, vector<32x16xf32> -> vector<32x16xf32>
    %4 = vector.broadcast %1 : vector<32x1xf32> to vector<32x16xf32>
    %5 = arith.addf %3, %4 : vector<32x16xf32>
    %cst_5 = arith.constant 5.000000e-01 : f32
    %6 = vector.broadcast %cst_5 : f32 to vector<32x16xf32>
    %7 = arith.mulf %6, %5 : vector<32x16xf32>
    %cst_6 = arith.constant 0.707106769 : f32
    %8 = vector.broadcast %cst_6 : f32 to vector<32x16xf32>
    %9 = arith.mulf %5, %8 : vector<32x16xf32>
    %10 = math.erf %9 : vector<32x16xf32>
    %cst_7 = arith.constant 1.000000e+00 : f32
    %11 = vector.broadcast %cst_7 : f32 to vector<32x16xf32>
    %12 = arith.addf %11, %10 : vector<32x16xf32>
    %13 = arith.mulf %7, %12 : vector<32x16xf32>
    %c0_8 = arith.constant 0 : index
    %c0_9 = arith.constant 0 : index
    %14 = vector.load %arg4[%c0_8, %c0_9] : memref<64x32xf32, #tpu.memory_space<vmem>>, vector<64x32xf32>
    %c0_10 = arith.constant 0 : index
    %c0_11 = arith.constant 0 : index
    %15 = vector.load %arg5[%c0_10, %c0_11] : memref<64x1xf32, #tpu.memory_space<vmem>>, vector<64x1xf32>
    %cst_12 = arith.constant dense<0.000000e+00> : vector<64x16xf32>
    %16 = tpu.matmul %14, %13, %cst_12 {dimension_numbers = #tpu.dot_dimension_numbers<[1], [0], [0], [1], [0, 0, 1, 1], [], []>} : vector<64x32xf32>, vector<32x16xf32>, vector<64x16xf32> -> vector<64x16xf32>
    %17 = vector.broadcast %15 : vector<64x1xf32> to vector<64x16xf32>
    %18 = arith.addf %16, %17 : vector<64x16xf32>
    %cst_13 = arith.constant 5.000000e-01 : f32
    %19 = vector.broadcast %cst_13 : f32 to vector<64x16xf32>
    %20 = arith.mulf %19, %18 : vector<64x16xf32>
    %cst_14 = arith.constant 0.707106769 : f32
    %21 = vector.broadcast %cst_14 : f32 to vector<64x16xf32>
    %22 = arith.mulf %18, %21 : vector<64x16xf32>
    %23 = math.erf %22 : vector<64x16xf32>
    %cst_15 = arith.constant 1.000000e+00 : f32
    %24 = vector.broadcast %cst_15 : f32 to vector<64x16xf32>
    %25 = arith.addf %24, %23 : vector<64x16xf32>
    %26 = arith.mulf %20, %25 : vector<64x16xf32>
    %c0_16 = arith.constant 0 : index
    %c0_17 = arith.constant 0 : index
    %27 = vector.load %arg6[%c0_16, %c0_17] : memref<32x64xf32, #tpu.memory_space<vmem>>, vector<32x64xf32>
    %c0_18 = arith.constant 0 : index
    %c0_19 = arith.constant 0 : index
    %28 = vector.load %arg7[%c0_18, %c0_19] : memref<32x1xf32, #tpu.memory_space<vmem>>, vector<32x1xf32>
    %cst_20 = arith.constant dense<0.000000e+00> : vector<32x16xf32>
    %29 = tpu.matmul %27, %26, %cst_20 {dimension_numbers = #tpu.dot_dimension_numbers<[1], [0], [0], [1], [0, 0, 1, 1], [], []>} : vector<32x64xf32>, vector<64x16xf32>, vector<32x16xf32> -> vector<32x16xf32>
    %30 = vector.broadcast %28 : vector<32x1xf32> to vector<32x16xf32>
    %31 = arith.addf %29, %30 : vector<32x16xf32>
    %cst_21 = arith.constant 5.000000e-01 : f32
    %32 = vector.broadcast %cst_21 : f32 to vector<32x16xf32>
    %33 = arith.mulf %32, %31 : vector<32x16xf32>
    %cst_22 = arith.constant 0.707106769 : f32
    %34 = vector.broadcast %cst_22 : f32 to vector<32x16xf32>
    %35 = arith.mulf %31, %34 : vector<32x16xf32>
    %36 = math.erf %35 : vector<32x16xf32>
    %cst_23 = arith.constant 1.000000e+00 : f32
    %37 = vector.broadcast %cst_23 : f32 to vector<32x16xf32>
    %38 = arith.addf %37, %36 : vector<32x16xf32>
    %39 = arith.mulf %33, %38 : vector<32x16xf32>
    %c0_24 = arith.constant 0 : index
    %c0_25 = arith.constant 0 : index
    %40 = vector.load %arg8[%c0_24, %c0_25] : memref<32x16xf32, #tpu.memory_space<vmem>>, vector<32x16xf32>
    tpu.vector_store %arg8[%c0_24, %c0_25], %39 {strides = array<i32>} : memref<32x16xf32, #tpu.memory_space<vmem>>, vector<32x16xf32>,
    return
  }
  func.func @transform_0(%arg0: i32) -> (i32, i32) {
    %c0_i32 = arith.constant 0 : i32
    %c0_i32_0 = arith.constant 0 : i32
    return %arg0, %c0_i32 : i32, i32
  }
  func.func @transform_1(%arg0: i32) -> (i32, i32) {
    %c0_i32 = arith.constant 0 : i32
    %c0_i32_0 = arith.constant 0 : i32
    %c0_i32_1 = arith.constant 0 : i32
    return %c0_i32, %c0_i32_0 : i32, i32
  }
  func.func @transform_2(%arg0: i32) -> (i32, i32) {
    %c0_i32 = arith.constant 0 : i32
    %c0_i32_0 = arith.constant 0 : i32
    %c0_i32_1 = arith.constant 0 : i32
    return %c0_i32, %c0_i32_0 : i32, i32
  }
  func.func @transform_3(%arg0: i32) -> (i32, i32) {
    %c0_i32 = arith.constant 0 : i32
    %c0_i32_0 = arith.constant 0 : i32
    %c0_i32_1 = arith.constant 0 : i32
    return %c0_i32, %c0_i32_0 : i32, i32
  }
  func.func @transform_4(%arg0: i32) -> (i32, i32) {
    %c0_i32 = arith.constant 0 : i32
    %c0_i32_0 = arith.constant 0 : i32
    %c0_i32_1 = arith.constant 0 : i32
    return %c0_i32, %c0_i32_0 : i32, i32
  }
  func.func @transform_5(%arg0: i32) -> (i32, i32) {
    %c0_i32 = arith.constant 0 : i32
    %c0_i32_0 = arith.constant 0 : i32
    %c0_i32_1 = arith.constant 0 : i32
    return %c0_i32, %c0_i32_0 : i32, i32
  }
  func.func @transform_6(%arg0: i32) -> (i32, i32) {
    %c0_i32 = arith.constant 0 : i32
    %c0_i32_0 = arith.constant 0 : i32
    %c0_i32_1 = arith.constant 0 : i32
    return %c0_i32, %c0_i32_0 : i32, i32
  }
  func.func @transform_7(%arg0: i32) -> (i32, i32) {
    %c0_i32 = arith.constant 0 : i32
    %c0_i32_0 = arith.constant 0 : i32
    return %c0_i32, %arg0 : i32, i32
  }
}

</mosaic_0001>

<bundles_post_ra>
// kernel: tpu_custom_call.1
= control target key start
LH: loop header
LB: loop body
LE: loop exit
PB: predicated region body
PF: predicated region fallthrough
CT: control target
= control target key end

     0   :  { %vm56_vm0 = vcmask 392192   ;;  %v734_v2 = vmov 0   ;;  %vm236_vm2 = vcmask 261120   ;;  %vm434_vm3 = vcmask 523264   ;;  %s907_s0 = inlined_call_operand.vmem [shape: f32[16,48], index: 0, kind: input, shape index: {}]   ;;  %s908_s1 = inlined_call_operand.vmem [shape: f32[32,48], index: 1, kind: input, shape index: {}]   ;;  %s909_s2 = inlined_call_operand.vmem [shape: f32[32,1], index: 2, kind: input, shape index: {}]   ;;  %s910_s4 = inlined_call_operand.vmem [shape: f32[64,1], index: 4, kind: input, shape index: {}]   ;;  %s911_s6 = inlined_call_operand.vmem [shape: f32[32,1], index: 6, kind: input, shape index: {}]   ;;  %s912_s3 = inlined_call_operand.vmem [shape: f32[64,32], index: 3, kind: input, shape index: {}]   ;;  %s913_s5 = inlined_call_operand.vmem [shape: f32[32,64], index: 5, kind: input, shape index: {}]   ;;  %s914_s7 = inlined_call_operand.vmem [shape: f32[32,16], index: 7, kind: output, shape index: {}]  }
   0x1   :  { %v34_v0 = vld [vmem:[%s907_s0] sm:$0xff]  ;;  %v35_v1 = vld [vmem:[%s907_s0 + $0x8] sm:$0xff]  ;;  %vm662_vm1 = vmpackc.low %vm56_vm0, %vm56_vm0  ;;  %700 = vset.pattern.permute.xlu0 %v734_v2  ;;  %701 = vset.pattern.permute.xlu1 %v734_v2  ;;  %vm552_vm4 = vcmask 130048  }
   0x2   :  { %v661_v3 = vpack.c.bf16 %v35_v1, %v34_v0  ;;  %v26_v4 = vld [vmem:[%s908_s1] sm:$0xff]  ;;  %v32_v6 = vld [vmem:[%s909_s2 + $0x10] sm:$0xff]  ;;  %v31_v7 = vld [vmem:[%s909_s2 + $0x8] sm:$0xff] }
   0x3   :  { %613 = vmatprep.mubr.msk.f32.mxu0 %vm56_vm0, %v26_v4  ;;  %v30_v5 = vld [vmem:[%s909_s2] sm:$0xff]  ;;  %48 = vperm.xlu1 %701, %v32_v6   ;;  %v33_v8 = vld [vmem:[%s909_s2 + $0x18] sm:$0xff]  ;;  %v27_v9 = vld [vmem:[%s908_s1 + $0x8] sm:$0xff] }
   0x4   :  { %663 = vmatprep.subr.msk.bf16.mxu0 %vm662_vm1, %v661_v3  ;;  %38 = vperm.xlu0 %700, %v30_v5   ;;  %v188_v10 = vld [vmem:[%s910_s4] sm:$0xff]  ;;  %v28_v11 = vld [vmem:[%s908_s1 + $0x10] sm:$0xff]  ;;  %v189_v12 = vld [vmem:[%s910_s4 + $0x8] sm:$0xff] }
   0x5   :  { %666 = vmatpush3.bf16.xpose.msk.msra.mxu0 %vm662_vm1, %v661_v3  ;;  %v29_v13 = vld [vmem:[%s908_s1 + $0x18] sm:$0xff]  ;;  %v190_v14 = vld [vmem:[%s910_s4 + $0x10] sm:$0xff]  ;;  %v192_v16 = vld [vmem:[%s910_s4 + $0x20] sm:$0xff] }
   0x6   :  { %v191_v15 = vld [vmem:[%s910_s4 + $0x18] sm:$0xff]  ;;  %v193_v17 = vld [vmem:[%s910_s4 + $0x28] sm:$0xff]  ;;  %v194_v18 = vld [vmem:[%s910_s4 + $0x30] sm:$0xff] }
   0x7   :  { %53 = vperm.xlu1 %701, %v33_v8   ;;  %v195_v19 = vld [vmem:[%s910_s4 + $0x38] sm:$0xff]  ;;  %v410_v20 = vld [vmem:[%s911_s6] sm:$0xff]  ;;  %v411_v21 = vld [vmem:[%s911_s6 + $0x8] sm:$0xff] }
   0x8   :  { %43 = vperm.xlu0 %700, %v31_v7   ;;  %v412_v22 = vld [vmem:[%s911_s6 + $0x10] sm:$0xff]  ;;  %v413_v23 = vld [vmem:[%s911_s6 + $0x18] sm:$0xff]  ;;  %v180_v24 = vld [vmem:[%s912_s3] sm:$0xff] }
   0x9   :  { %627 = vmatprep.mubr.msk.f32.mxu1 %vm236_vm2, %v180_v24  ;;  %v181_v59 = vld [vmem:[%s912_s3 + $0x8] sm:$0xff]  ;;  %v182_v60 = vld [vmem:[%s912_s3 + $0x10] sm:$0xff]  ;;  %v183_v61 = vld [vmem:[%s912_s3 + $0x18] sm:$0xff] }
   0xa   :  { %v184_v62 = vld [vmem:[%s912_s3 + $0x20] sm:$0xff]  ;;  %v185_v63 = vld [vmem:[%s912_s3 + $0x28] sm:$0xff]  ;;  %v186_v0 = vld [vmem:[%s912_s3 + $0x30] sm:$0xff] }
   0xb   :  { %203 = vperm.xlu1 %701, %v189_v12   ;;  %v187_v1 = vld [vmem:[%s912_s3 + $0x38] sm:$0xff]  ;;  %v406_v2 = vld [vmem:[%s913_s5] sm:$0xff]  ;;  %v408_v3 = vld [vmem:[%s913_s5 + $0x10] sm:$0xff] }
   0xc   :  { %614 = vmatmul.mubr.msk.f32.vlgmr.msra.gmra.mrb[0].mxu0 %vm56_vm0, %v27_v9  ;;  %198 = vperm.xlu0 %700, %v188_v10  }
   0xd   :  { %616 = vmatprep.mubr.msk.f32.mxu0 %vm56_vm0, %v28_v11 }
   0xf   :  { %213 = vperm.xlu1 %701, %v191_v15  }
  0x10   :  { %617 = vmatmul.mubr.msk.f32.gmra.mrb[2].mxu0 %vm56_vm0, %v29_v13  ;;  %208 = vperm.xlu0 %700, %v190_v14  }
  0x11   :  { %655 = vmatprep.mubr.msk.f32.mxu0 %vm434_vm3, %v406_v2 }
  0x13   :  { %223 = vperm.xlu1 %701, %v193_v17  }
  0x14   :  { %218 = vperm.xlu0 %700, %v192_v16  }
  0x17   :  { %233 = vperm.xlu1 %701, %v195_v19  }
  0x18   :  { %228 = vperm.xlu0 %700, %v194_v18  }
  0x1b   :  { %421 = vperm.xlu1 %701, %v411_v21  }
  0x1c   :  { %416 = vperm.xlu0 %700, %v410_v20  }
  0x1f   :  { %431 = vperm.xlu1 %701, %v413_v23  }
  0x20   :  { %426 = vperm.xlu0 %700, %v412_v22  }
  0x82   :  { %v49_v26 = vpop.permute.xlu1 %48 }
  0x83   :  { %v39_v25 = vpop.permute.xlu0 %38 }
  0x86   :  { %v54_v33 = vpop.permute.xlu1 %53 }
  0x87   :  { %v44_v27 = vpop.permute.xlu0 %43 }
  0x8a   :  { %v204_v4 = vpop.permute.xlu1 %203 }
  0x8b   :  { %v199_v5 = vpop.permute.xlu0 %198 }
  0x8e   :  { %v214_v6 = vpop.permute.xlu1 %213 }
  0x8f   :  { %v209_v8 = vpop.permute.xlu0 %208 }
  0x92   :  { %v224_v17 = vpop.permute.xlu1 %223 }
  0x93   :  { %v219_v19 = vpop.permute.xlu0 %218 }
  0xdf   :  { %v615_v28 = vpop.f32.mrb[0].mxu0 }
  0xe0   :  { %v147_v29 = vadd.f32 %v615_v28, %v44_v27  ;;  %v141_v30 = vpop.f32.mrb[1].mxu0  ;;  %v234_v27 = vpop.permute.xlu1 %233 }
  0xe1   :  { %v142_v31 = vadd.f32 %v141_v30, %v39_v25  ;;  %v229_v30 = vpop.permute.xlu0 %228 }
  0xe2   :  { %v165_v32 = vmul.f32 0.70710677, %v147_v29  ;;  %v161_v43 = vmul.f32 0.5, %v147_v29 }
  0xe3   :  { %v164_v34 = vmul.f32 0.70710677, %v142_v31  ;;  %v618_v35 = vpop.f32.mrb[2].mxu0  ;;  %v160_v45 = vmul.f32 0.5, %v142_v31 }
  0xe4   :  { %702 = verf.f32 %v165_v32  ;;  %v157_v36 = vadd.f32 %v618_v35, %v54_v33  ;;  %v151_v37 = vpop.f32.mrb[3].mxu0 }
  0xe5   :  { %704 = verf.f32 %v164_v34  ;;  %v152_v38 = vadd.f32 %v151_v37, %v49_v26 }
  0xe6   :  { %v167_v39 = vmul.f32 0.70710677, %v157_v36  ;;  %v163_v51 = vmul.f32 0.5, %v157_v36 }
  0xe7   :  { %v166_v40 = vmul.f32 0.70710677, %v152_v38  ;;  %v162_v53 = vmul.f32 0.5, %v152_v38 }
  0xe8   :  { %706 = verf.f32 %v167_v39 }
  0xe9   :  { %708 = verf.f32 %v166_v40 }
  0xee   :  { %v703_v41 = vpop.eup %702 }
  0xef   :  { %v705_v42 = vpop.eup %704  ;;  %v173_v44 = vadd.f32 1.0, %v703_v41 }
  0xf0   :  { %v172_v46 = vadd.f32 1.0, %v705_v42 }
  0xf1   :  { %v177_v47 = vmul.f32 %v173_v44, %v161_v43 }
  0xf2   :  { %v707_v48 = vpop.eup %706  ;;  %v176_v49 = vmul.f32 %v172_v46, %v160_v45 }
  0xf3   :  { %v709_v50 = vpop.eup %708  ;;  %v175_v52 = vadd.f32 1.0, %v707_v48 }
  0xf4   :  { %v174_v54 = vadd.f32 1.0, %v709_v50  ;;  %v667_v55 = vpack.c.bf16 %v177_v47, %v176_v49 }
  0xf5   :  { %v179_v56 = vmul.f32 %v175_v52, %v163_v51 }
  0xf6   :  { %v178_v57 = vmul.f32 %v174_v54, %v162_v53  ;;  %668 = vmatprep.subr.bf16.mxu1 %v667_v55 }
  0xf7   :  { %670 = vmatpush3.bf16.msra.mxu1 %v667_v55 }
  0xf8   :  { %v671_v58 = vpack.c.bf16 %v179_v56, %v178_v57 }
  0xfa   :  { %672 = vmatprep.subr.bf16.mxu1 %v671_v58 }
  0xfb   :  { %674 = vmatpush3.bf16.msra.mxu1 %v671_v58 }
  0xfe   :  { %628 = vmatmul.mubr.msk.f32.vlgmr.msra.gmra.mrb[0].mxu1 %vm236_vm2, %v181_v59 }
  0xff   :  { %630 = vmatprep.mubr.msk.f32.mxu1 %vm236_vm2, %v182_v60 }
 0x102   :  { %631 = vmatmul.mubr.msk.f32.gmra.mrb[2].mxu1 %vm236_vm2, %v183_v61 }
 0x103   :  { %633 = vmatprep.mubr.msk.f32.mxu1 %vm236_vm2, %v184_v62 }
 0x106   :  { %634 = vmatmul.mubr.msk.f32.gmra.mrb[4].mxu1 %vm236_vm2, %v185_v63 }
 0x107   :  { %636 = vmatprep.mubr.msk.f32.mxu1 %vm236_vm2, %v186_v0 }
 0x10a   :  { %637 = vmatmul.mubr.msk.f32.gmra.mrb[6].mxu1 %vm236_vm2, %v187_v1 }
 0x10b   :  { %658 = vmatprep.mubr.msk.f32.mxu1 %vm434_vm3, %v408_v3 }
 0x1d1   :  { %v629_v7 = vpop.f32.mrb[0].mxu1 }
 0x1d2   :  { %v333_v9 = vadd.f32 %v629_v7, %v204_v4  ;;  %v327_v10 = vpop.f32.mrb[1].mxu1 }
 0x1d3   :  { %v328_v11 = vadd.f32 %v327_v10, %v199_v5  ;;  %v417_v10 = vpop.permute.xlu0 %416 }
 0x1d4   :  { %v375_v12 = vmul.f32 0.70710677, %v333_v9  ;;  %v367_v37 = vmul.f32 0.5, %v333_v9  ;;  %v409_v9 = vld [vmem:[%s913_s5 + $0x18] sm:$0xff] }
 0x1d5   :  { %v374_v13 = vmul.f32 0.70710677, %v328_v11  ;;  %v632_v14 = vpop.f32.mrb[2].mxu1  ;;  %v366_v40 = vmul.f32 0.5, %v328_v11  ;;  %v422_v11 = vpop.permute.xlu1 %421 }
 0x1d6   :  { %710 = verf.f32 %v375_v12  ;;  %v343_v15 = vadd.f32 %v632_v14, %v214_v6  ;;  %v337_v16 = vpop.f32.mrb[3].mxu1 }
 0x1d7   :  { %712 = verf.f32 %v374_v13  ;;  %v338_v18 = vadd.f32 %v337_v16, %v209_v8  ;;  %v407_v8 = vld [vmem:[%s913_s5 + $0x8] sm:$0xff]  ;;  %v427_v12 = vpop.permute.xlu0 %426 }
 0x1d8   :  { %v377_v20 = vmul.f32 0.70710677, %v343_v15  ;;  %v369_v46 = vmul.f32 0.5, %v343_v15 }
 0x1d9   :  { %v376_v21 = vmul.f32 0.70710677, %v338_v18  ;;  %v635_v22 = vpop.f32.mrb[4].mxu1  ;;  %v368_v49 = vmul.f32 0.5, %v338_v18  ;;  %v432_v13 = vpop.permute.xlu1 %431 }
 0x1da   :  { %714 = verf.f32 %v377_v20  ;;  %v353_v23 = vadd.f32 %v635_v22, %v224_v17  ;;  %v347_v24 = vpop.f32.mrb[5].mxu1 }
 0x1db   :  { %716 = verf.f32 %v376_v21  ;;  %v348_v25 = vadd.f32 %v347_v24, %v219_v19 }
 0x1dc   :  { %v379_v26 = vmul.f32 0.70710677, %v353_v23  ;;  %v371_v55 = vmul.f32 0.5, %v353_v23 }
 0x1dd   :  { %v378_v28 = vmul.f32 0.70710677, %v348_v25  ;;  %v638_v29 = vpop.f32.mrb[6].mxu1  ;;  %v370_v58 = vmul.f32 0.5, %v348_v25 }
 0x1de   :  { %718 = verf.f32 %v379_v26  ;;  %v363_v31 = vadd.f32 %v638_v29, %v234_v27  ;;  %v357_v32 = vpop.f32.mrb[7].mxu1 }
 0x1df   :  { %720 = verf.f32 %v378_v28  ;;  %v358_v33 = vadd.f32 %v357_v32, %v229_v30 }
 0x1e0   :  { %v711_v34 = vpop.eup %710  ;;  %v381_v35 = vmul.f32 0.70710677, %v363_v31  ;;  %v373_v0 = vmul.f32 0.5, %v363_v31 }
 0x1e1   :  { %v713_v36 = vpop.eup %712  ;;  %v391_v38 = vadd.f32 1.0, %v711_v34  ;;  %v380_v39 = vmul.f32 0.70710677, %v358_v33  ;;  %v372_v3 = vmul.f32 0.5, %v358_v33 }
 0x1e2   :  { %v390_v41 = vadd.f32 1.0, %v713_v36  ;;  %722 = verf.f32 %v381_v35 }
 0x1e3   :  { %v399_v42 = vmul.f32 %v391_v38, %v367_v37  ;;  %724 = verf.f32 %v380_v39 }
 0x1e4   :  { %v715_v43 = vpop.eup %714  ;;  %v398_v44 = vmul.f32 %v390_v41, %v366_v40 }
 0x1e5   :  { %v717_v45 = vpop.eup %716  ;;  %v393_v47 = vadd.f32 1.0, %v715_v43 }
 0x1e6   :  { %v675_v48 = vpack.c.bf16 %v399_v42, %v398_v44  ;;  %v392_v50 = vadd.f32 1.0, %v717_v45 }
 0x1e7   :  { %v401_v51 = vmul.f32 %v393_v47, %v369_v46 }
 0x1e8   :  { %v719_v52 = vpop.eup %718  ;;  %v400_v53 = vmul.f32 %v392_v50, %v368_v49  ;;  %676 = vmatprep.subr.bf16.mxu0 %v675_v48  ;;  %691 = vmatprep.subr.bf16.mxu1 %v675_v48 }
 0x1e9   :  { %v721_v54 = vpop.eup %720  ;;  %v395_v56 = vadd.f32 1.0, %v719_v52  ;;  %678 = vmatpush3.bf16.msra.mxu0 %v675_v48  ;;  %695 = vmatpush3.bf16.msra.mxu1 %v675_v48 }
 0x1ea   :  { %v679_v57 = vpack.c.bf16 %v401_v51, %v400_v53  ;;  %v394_v59 = vadd.f32 1.0, %v721_v54 }
 0x1eb   :  { %v403_v60 = vmul.f32 %v395_v56, %v371_v55 }
 0x1ec   :  { %v723_v61 = vpop.eup %722  ;;  %v402_v62 = vmul.f32 %v394_v59, %v370_v58  ;;  %680 = vmatprep.subr.bf16.mxu0 %v679_v57  ;;  %692 = vmatprep.subr.bf16.mxu1 %v679_v57 }
 0x1ed   :  { %v725_v63 = vpop.eup %724  ;;  %v397_v1 = vadd.f32 1.0, %v723_v61  ;;  %682 = vmatpush3.bf16.msra.mxu0 %v679_v57  ;;  %696 = vmatpush3.bf16.msra.mxu1 %v679_v57 }
 0x1ee   :  { %v683_v2 = vpack.c.bf16 %v403_v60, %v402_v62  ;;  %v396_v4 = vadd.f32 1.0, %v725_v63 }
 0x1ef   :  { %v405_v5 = vmul.f32 %v397_v1, %v373_v0 }
 0x1f0   :  { %v404_v6 = vmul.f32 %v396_v4, %v372_v3  ;;  %684 = vmatprep.subr.bf16.mxu0 %v683_v2  ;;  %693 = vmatprep.subr.bf16.mxu1 %v683_v2 }
 0x1f1   :  { %686 = vmatpush3.bf16.msra.mxu0 %v683_v2  ;;  %697 = vmatpush3.bf16.msra.mxu1 %v683_v2 }
 0x1f2   :  { %v687_v7 = vpack.c.bf16 %v405_v5, %v404_v6 }
 0x1f4   :  { %688 = vmatprep.subr.bf16.mxu0 %v687_v7  ;;  %694 = vmatprep.subr.bf16.mxu1 %v687_v7 }
 0x1f5   :  { %690 = vmatpush3.bf16.msra.mxu0 %v687_v7  ;;  %698 = vmatpush3.bf16.msra.mxu1 %v687_v7 }
 0x1f8   :  { %656 = vmatmul.mubr.msk.f32.vlgmr.msra.gmra.mrb[4].mxu0 %vm434_vm3, %v407_v8  ;;  %659 = vmatmul.mubr.msk.f32.vlgmr.msra.gmra.mrb[8].mxu1 %vm434_vm3, %v409_v9 }
 0x2cb   :  { %v657_v14 = vpop.f32.mrb[4].mxu0  ;;  %v660_v15 = vpop.f32.mrb[8].mxu1 }
 0x2cc   :  { %v519_v16 = vadd.f32 %v657_v14, %v422_v11  ;;  %v529_v17 = vadd.f32 %v660_v15, %v432_v13  ;;  %v513_v18 = vpop.f32.mrb[5].mxu0  ;;  %v523_v19 = vpop.f32.mrb[9].mxu1 }
 0x2cd   :  { %v514_v20 = vadd.f32 %v513_v18, %v417_v10  ;;  %v524_v21 = vadd.f32 %v523_v19, %v427_v12 }
 0x2ce   :  { %v537_v22 = vmul.f32 0.70710677, %v519_v16  ;;  %v539_v23 = vmul.f32 0.70710677, %v529_v17  ;;  %v533_v28 = vmul.f32 0.5, %v519_v16  ;;  %v535_v31 = vmul.f32 0.5, %v529_v17 }
 0x2cf   :  { %v536_v24 = vmul.f32 0.70710677, %v514_v20  ;;  %v538_v25 = vmul.f32 0.70710677, %v524_v21  ;;  %v532_v35 = vmul.f32 0.5, %v514_v20  ;;  %v534_v38 = vmul.f32 0.5, %v524_v21 }
 0x2d0   :  { %726 = verf.f32 %v537_v22 }
 0x2d1   :  { %728 = verf.f32 %v539_v23 }
 0x2d2   :  { %730 = verf.f32 %v536_v24 }
 0x2d3   :  { %732 = verf.f32 %v538_v25 }
 0x2da   :  { %v727_v26 = vpop.eup %726 }
 0x2db   :  { %v729_v27 = vpop.eup %728  ;;  %v545_v29 = vadd.f32 1.0, %v727_v26 }
 0x2dc   :  { %v731_v30 = vpop.eup %730  ;;  %v547_v32 = vadd.f32 1.0, %v729_v27 }
 0x2dd   :  { %v733_v33 = vpop.eup %732  ;;  %v549_v34 = vmul.f32 %v545_v29, %v533_v28  ;;  %v544_v36 = vadd.f32 1.0, %v731_v30 }
 0x2de   :  { %v551_v37 = vmul.f32 %v547_v32, %v535_v31  ;;  %v546_v39 = vadd.f32 1.0, %v733_v33 }
 0x2df   :  { %554 = vst.msk [vmem:[%s914_s7 + $0x8] sm:$0xff] %vm552_vm4, %v549_v34  ;;  %v548_v40 = vmul.f32 %v544_v36, %v532_v35 }
 0x2e0   :  { %556 = vst.msk [vmem:[%s914_s7 + $0x18] sm:$0xff] %vm552_vm4, %v551_v37  ;;  %v550_v41 = vmul.f32 %v546_v39, %v534_v38 }
 0x2e1   :  { %553 = vst.msk [vmem:[%s914_s7] sm:$0xff] %vm552_vm4, %v548_v40 }
 0x2e2   :  { %555 = vst.msk [vmem:[%s914_s7 + $0x10] sm:$0xff] %vm552_vm4, %v550_v41 }

</bundles_post_ra>
